<compile_context>
chip_gen: v7x
topology: tpu7x:2x2x1
jax: 0.10.0
libtpu: 0.0.40
codegen_flags: <defaults>
</compile_context>

<pallas_src>
import jax
import jax.numpy as jnp
from jax import lax
from jax.experimental import pallas as pl
from jax.experimental.pallas import tpu as pltpu

EPS = 1e-5  # nn.BatchNorm2d default eps


# --------------------------- Kernel 1: conv + BN partial stats ----------------
def _conv_stats_kernel(p_ref, w_ref, y_ref, s_ref, ss_ref):
    # p_ref : (TM, K_PAD)   bf16 im2col patch tile
    # w_ref : (K_PAD, C)    bf16 conv1 weight matrix (zero padded along K)
    # y_ref : (TM, C)       f32 conv output tile
    # s_ref, ss_ref : (1, 1, C) f32 per-tile channel sum / sum of squares
    y = jnp.dot(p_ref[...], w_ref[...], preferred_element_type=jnp.float32)
    y_ref[...] = y
    s_ref[0] = jnp.sum(y, axis=0, keepdims=True)
    ss_ref[0] = jnp.sum(y * y, axis=0, keepdims=True)


# --------------------- Kernel 2: BN affine + ReLU + 3x3/s2 maxpool ------------
def _make_bn_relu_pool_kernel(OH, PW, PH, C):
    two_c = 2 * C

    def kernel(yv_ref, sc_ref, sh_ref, o_ref):
        # yv_ref : (1, OH, PW, 2C)  conv output; W split into (even|odd) column
        #                           pairs packed along the lane dim
        # sc_ref, sh_ref : (1, 2C)  folded BN scale / shift (per channel, x2)
        # o_ref  : (1, PH, PW, C)   pooled output
        sc = sc_ref[...].reshape(1, 1, two_c)
        sh = sh_ref[...].reshape(1, 1, two_c)
        z = jnp.maximum(yv_ref[0] * sc + sh, 0.0)            # (OH, PW, 2C), >= 0

        # Vertical 3-tap max over rows {2i-1, 2i, 2i+1}; zero-pad safe post-ReLU.
        zr = z.reshape(PH, 2, PW, two_c)                     # leading-dim split only
        r_even = zr[:, 0]                                    # rows 2i
        r_odd = zr[:, 1]                                     # rows 2i+1
        if PH > 1:
            r_up = jnp.concatenate(                          # rows 2i-1
                [jnp.zeros((1, PW, two_c), jnp.float32), r_odd[:PH - 1]], axis=0)
        else:
            r_up = jnp.zeros_like(r_odd)
        v = jnp.maximum(jnp.maximum(r_even, r_odd), r_up)    # (PH, PW, 2C)

        # Horizontal 3-tap max over cols {2j-1, 2j, 2j+1} via lane slices.
        c_even = v[:, :, :C]                                 # cols 2j
        c_odd = v[:, :, C:]                                  # cols 2j+1
        if PW > 1:
            c_left = jnp.concatenate(                        # cols 2j-1
                [jnp.zeros((PH, 1, C), jnp.float32), c_odd[:, :PW - 1, :]], axis=1)
        else:
            c_left = jnp.zeros_like(c_odd)
        o_ref[0] = jnp.maximum(jnp.maximum(c_even, c_odd), c_left)

    return kernel


def client_model_resnet50_forward(x_nchw, conv_w_oihw, bn_gamma, bn_beta):
    """Forward pass of ClientModelResNet50 (conv1 -> bn1 -> relu -> maxpool)."""
    N, C_IN, H, W = x_nchw.shape
    C_OUT, _, KH, KW = conv_w_oihw.shape
    assert H % 4 == 0 and W % 4 == 0, "stem expects spatial dims divisible by 4"
    OH, OW = H // 2, W // 2        # conv1: 7x7, stride 2, pad 3
    PH, PW = OH // 2, OW // 2      # maxpool: 3x3, stride 2, pad 1
    K = KH * KW * C_IN
    K_PAD = ((K + 127) // 128) * 128      # 147 -> 256: lane-dense contraction dim
    M = N * OH * OW
    TM = 256                               # MXU/DMA-friendly row tile (mult. of 256)
    M_PAD = ((M + TM - 1) // TM) * TM
    num_tiles = M_PAD // TM

    # ---- glue: bf16 im2col patch extraction (pure indexing), zero padded ----
    x_nhwc = jnp.transpose(x_nchw, (0, 2, 3, 1)).astype(jnp.bfloat16)
    xp = jnp.pad(x_nhwc, ((0, 0), (3, 3), (3, 3), (0, 0)))
    cols = []
    for kh in range(KH):
        for kw in range(KW):
            cols.append(xp[:, kh:kh + 2 * OH - 1:2, kw:kw + 2 * OW - 1:2, :])
    patches = jnp.stack(cols, axis=3).reshape(M, K)          # feature order (kh, kw, c)
    patches = jnp.pad(patches, ((0, M_PAD - M), (0, K_PAD - K)))

    w_mat = jnp.transpose(conv_w_oihw, (2, 3, 1, 0)).reshape(K, C_OUT)
    w_mat = jnp.pad(w_mat, ((0, K_PAD - K), (0, 0))).astype(jnp.bfloat16)

    # ---- kernel 1: tiled conv matmul + per-tile BN partial sums ----
    y_flat, t_sum, t_sq = pl.pallas_call(
        _conv_stats_kernel,
        out_shape=(
            jax.ShapeDtypeStruct((M_PAD, C_OUT), jnp.float32),
            jax.ShapeDtypeStruct((num_tiles, 1, C_OUT), jnp.float32),
            jax.ShapeDtypeStruct((num_tiles, 1, C_OUT), jnp.float32),
        ),
        grid=(num_tiles,),
        in_specs=[
            pl.BlockSpec((TM, K_PAD), lambda i: (i, 0)),
            pl.BlockSpec((K_PAD, C_OUT), lambda i: (0, 0)),
        ],
        out_specs=(
            pl.BlockSpec((TM, C_OUT), lambda i: (i, 0)),
            pl.BlockSpec((1, 1, C_OUT), lambda i: (i, 0, 0)),
            pl.BlockSpec((1, 1, C_OUT), lambda i: (i, 0, 0)),
        ),
        compiler_params=pltpu.CompilerParams(
            dimension_semantics=("parallel",),   # v7x: row tiles split over 2 TCs
        ),
    )(patches, w_mat)

    # ---- glue: finalize BN batch stats (64 floats) and fold the affine ----
    cnt = jnp.float32(M)                     # zero-padded rows contribute 0 to sums
    mean = jnp.sum(t_sum[:, 0, :], axis=0) / cnt
    var = jnp.maximum(jnp.sum(t_sq[:, 0, :], axis=0) / cnt - mean * mean, 0.0)
    scale = bn_gamma.astype(jnp.float32) * lax.rsqrt(var + EPS)
    shift = bn_beta.astype(jnp.float32) - mean * scale
    scale2 = jnp.tile(scale, 2).reshape(1, 2 * C_OUT)   # lanes = (even col | odd col)
    shift2 = jnp.tile(shift, 2).reshape(1, 2 * C_OUT)

    # glue: free row-major reshape — W split into even/odd column pairs on lanes
    y_valid = y_flat if M_PAD == M else y_flat[:M]
    y_v = y_valid.reshape(N, OH, PW, 2 * C_OUT)

    # ---- kernel 2: BN affine + ReLU + 9-tap max pool, one image per grid step ----
    pooled = pl.pallas_call(
        _make_bn_relu_pool_kernel(OH, PW, PH, C_OUT),
        out_shape=jax.ShapeDtypeStruct((N, PH, PW, C_OUT), jnp.float32),
        grid=(N,),
        in_specs=[
            pl.BlockSpec((1, OH, PW, 2 * C_OUT), lambda n: (n, 0, 0, 0)),
            pl.BlockSpec((1, 2 * C_OUT), lambda n: (0, 0)),
            pl.BlockSpec((1, 2 * C_OUT), lambda n: (0, 0)),
        ],
        out_specs=pl.BlockSpec((1, PH, PW, C_OUT), lambda n: (n, 0, 0, 0)),
        compiler_params=pltpu.CompilerParams(
            dimension_semantics=("parallel",),   # v7x: one image per TC
        ),
    )(y_v, scale2, shift2)

    # glue: pooled NHWC -> NCHW
    return jnp.transpose(pooled, (0, 3, 1, 2))


def _reference_forward(x_nchw, conv_w_oihw, bn_gamma, bn_beta):
    """Pure-JAX reference of the same forward pass (for correctness check)."""
    y = lax.conv_general_dilated(
        x_nchw, conv_w_oihw, window_strides=(2, 2), padding=((3, 3), (3, 3)),
        dimension_numbers=("NCHW", "OIHW", "NCHW"),
        precision=lax.Precision.HIGHEST)
    mean = jnp.mean(y, axis=(0, 2, 3), keepdims=True)
    var = jnp.mean(jnp.square(y - mean), axis=(0, 2, 3), keepdims=True)
    y = (y - mean) * lax.rsqrt(var + EPS)
    y = y * bn_gamma[None, :, None, None] + bn_beta[None, :, None, None]
    y = jnp.maximum(y, 0.0)
    y = lax.reduce_window(y, -jnp.inf, lax.max,
                          (1, 1, 3, 3), (1, 1, 2, 2),
                          ((0, 0), (0, 0), (1, 1), (1, 1)))
    return y


if __name__ == "__main__":
    key = jax.random.PRNGKey(0)
    k1, k2, k3, k4 = jax.random.split(key, 4)
    # ResNet-50 stem: conv1 expects 3 input channels, 64 output channels.
    x = jax.random.normal(k1, (2, 3, 32, 32), jnp.float32)
    conv_w = jax.random.normal(k2, (64, 3, 7, 7), jnp.float32) / jnp.sqrt(3.0 * 7 * 7)
    gamma = 1.0 + 0.1 * jax.random.normal(k3, (64,), jnp.float32)
    beta = 0.1 * jax.random.normal(k4, (64,), jnp.float32)

    out = client_model_resnet50_forward(x, conv_w, gamma, beta)
    out = jax.block_until_ready(out)
    assert out.shape == (2, 64, 8, 8), out.shape

    ref = _reference_forward(x, conv_w, gamma, beta)
    err = float(jnp.max(jnp.abs(out - ref)))
    assert err < 5e-2, f"max abs error {err}"
    print("KERNEL_OK")
</pallas_src>

<mosaic_0001>
module attributes {stable_mosaic.version = 11 : i64} {
  func.func @_conv_stats_kernel(%arg0: i32, %arg1: memref<256x256xbf16, #tpu.memory_space<vmem>>, %arg2: memref<256x64xbf16, #tpu.memory_space<vmem>>, %arg3: memref<256x64xf32, #tpu.memory_space<vmem>>, %arg4: memref<1x1x64xf32, #tpu.memory_space<vmem>>, %arg5: memref<1x1x64xf32, #tpu.memory_space<vmem>>) attributes {dimension_semantics = [#tpu.dimension_semantics<parallel>], iteration_bounds = array<i64: 2>, scalar_prefetch = 0 : i64, scratch_operands = 0 : i64, tpu.core_type = #tpu.core_type<tc>, window_params = [{transform_indices = @transform_0, window_bounds = array<i64: 256, 256>}, {pipeline_mode = #tpu.pipeline_mode<synchronous>, transform_indices = @transform_1, window_bounds = array<i64: 256, 64>}, {transform_indices = @transform_2, window_bounds = array<i64: 256, 64>}, {transform_indices = @transform_3, window_bounds = array<i64: 1, 1, 64>}, {transform_indices = @transform_4, window_bounds = array<i64: 1, 1, 64>}]} {
    %c0 = arith.constant 0 : index
    %c0_0 = arith.constant 0 : index
    %0 = vector.load %arg1[%c0, %c0_0] : memref<256x256xbf16, #tpu.memory_space<vmem>>, vector<256x256xbf16>
    %c0_1 = arith.constant 0 : index
    %c0_2 = arith.constant 0 : index
    %1 = vector.load %arg2[%c0_1, %c0_2] : memref<256x64xbf16, #tpu.memory_space<vmem>>, vector<256x64xbf16>
    %cst = arith.constant dense<0.000000e+00> : vector<256x64xf32>
    %2 = tpu.matmul %0, %1, %cst {dimension_numbers = #tpu.dot_dimension_numbers<[1], [0], [0], [1], [0, 0, 1, 1], [], []>} : vector<256x256xbf16>, vector<256x64xbf16>, vector<256x64xf32> -> vector<256x64xf32>
    %c0_3 = arith.constant 0 : index
    %c0_4 = arith.constant 0 : index
    %3 = vector.load %arg3[%c0_3, %c0_4] : memref<256x64xf32, #tpu.memory_space<vmem>>, vector<256x64xf32>
    tpu.vector_store %arg3[%c0_3, %c0_4], %2 {strides = array<i32>} : memref<256x64xf32, #tpu.memory_space<vmem>>, vector<256x64xf32>,
    %cst_5 = arith.constant dense<0.000000e+00> : vector<64xf32>
    %4 = vector.multi_reduction <add>, %2, %cst_5 [0] : vector<256x64xf32> to vector<64xf32>
    %5 = vector.shape_cast %4 : vector<64xf32> to vector<1x64xf32>
    %c0_6 = arith.constant 0 : index
    %c0_7 = arith.constant 0 : index
    %c0_8 = arith.constant 0 : index
    %6 = vector.load %arg4[%c0_6, %c0_7, %c0_8] : memref<1x1x64xf32, #tpu.memory_space<vmem>>, vector<1x1x64xf32>
    %7 = vector.shape_cast %6 : vector<1x1x64xf32> to vector<1x64xf32>
    %8 = vector.shape_cast %5 : vector<1x64xf32> to vector<1x1x64xf32>
    tpu.vector_store %arg4[%c0_6, %c0_7, %c0_8], %8 {strides = array<i32>} : memref<1x1x64xf32, #tpu.memory_space<vmem>>, vector<1x1x64xf32>,
    %9 = arith.mulf %2, %2 : vector<256x64xf32>
    %cst_9 = arith.constant dense<0.000000e+00> : vector<64xf32>
    %10 = vector.multi_reduction <add>, %9, %cst_9 [0] : vector<256x64xf32> to vector<64xf32>
    %11 = vector.shape_cast %10 : vector<64xf32> to vector<1x64xf32>
    %c0_10 = arith.constant 0 : index
    %c0_11 = arith.constant 0 : index
    %c0_12 = arith.constant 0 : index
    %12 = vector.load %arg5[%c0_10, %c0_11, %c0_12] : memref<1x1x64xf32, #tpu.memory_space<vmem>>, vector<1x1x64xf32>
    %13 = vector.shape_cast %12 : vector<1x1x64xf32> to vector<1x64xf32>
    %14 = vector.shape_cast %11 : vector<1x64xf32> to vector<1x1x64xf32>
    tpu.vector_store %arg5[%c0_10, %c0_11, %c0_12], %14 {strides = array<i32>} : memref<1x1x64xf32, #tpu.memory_space<vmem>>, vector<1x1x64xf32>,
    return
  }
  func.func @transform_0(%arg0: i32) -> (i32, i32) {
    %c0_i32 = arith.constant 0 : i32
    %c0_i32_0 = arith.constant 0 : i32
    return %arg0, %c0_i32 : i32, i32
  }
  func.func @transform_1(%arg0: i32) -> (i32, i32) {
    %c0_i32 = arith.constant 0 : i32
    %c0_i32_0 = arith.constant 0 : i32
    %c0_i32_1 = arith.constant 0 : i32
    return %c0_i32, %c0_i32_0 : i32, i32
  }
  func.func @transform_2(%arg0: i32) -> (i32, i32) {
    %c0_i32 = arith.constant 0 : i32
    %c0_i32_0 = arith.constant 0 : i32
    return %arg0, %c0_i32 : i32, i32
  }
  func.func @transform_3(%arg0: i32) -> (i32, i32, i32) {
    %c0_i32 = arith.constant 0 : i32
    %c0_i32_0 = arith.constant 0 : i32
    %c0_i32_1 = arith.constant 0 : i32
    return %arg0, %c0_i32, %c0_i32_0 : i32, i32, i32
  }
  func.func @transform_4(%arg0: i32) -> (i32, i32, i32) {
    %c0_i32 = arith.constant 0 : i32
    %c0_i32_0 = arith.constant 0 : i32
    %c0_i32_1 = arith.constant 0 : i32
    return %arg0, %c0_i32, %c0_i32_0 : i32, i32, i32
  }
}

</mosaic_0001>

<bundles_post_ra>
// kernel: tpu_custom_call.1
= control target key start
LH: loop header
LB: loop body
LE: loop exit
PB: predicated region body
PF: predicated region fallthrough
CT: control target
= control target key end

     0   :  { %10 = vsyncpa [#allocation3], 0  ;;  %s2053_s0 = inlined_call_operand.hbm [shape: bf16[512,256], index: 0, kind: input, shape index: {}]   ;;  %s2054_s1 = inlined_call_operand.vmem [shape: bf16[256,64], index: 1, kind: input, shape index: {}]   ;;  %s2055_s2 = inlined_call_operand.vmem [shape: f32[512,64], index: 2, kind: output, shape index: {0}]   ;;  %s2056_s3 = inlined_call_operand.hbm [shape: f32[2,1,64], index: 3, kind: output, shape index: {1}]   ;;  %s2057_s4 = inlined_call_operand.hbm [shape: f32[2,1,64], index: 4, kind: output, shape index: {2}]  }
   0x1   :  { %12 = vsyncpa [#allocation3 + $0x1], 0 }
   0x2   :  { %13 = vsyncpa [#allocation4], 0 }
   0x3   :  { %15 = vsyncpa [#allocation4 + $0x1], 0 }
   0x4   :  { %16 = vsyncpa [#allocation7], 0 }
   0x5   :  { %18 = vsyncpa [#allocation7 + $0x1], 0  ;;  %s1556_s15 = smov 0   ;;  %s1558_s16 = smov 0  }
   0x6   :  { %s1560_s17 = smov 0   ;;  %s1562_s18 = smov 0  }
   0x7 LB: > { %s1577_s19 = sadd.s32 4294967295, %s1524_s18   ;;  %s1086_s20 = sadd.s32 4294967294, %s1524_s18   ;;  %s1524_s18 = sphi %s1562_s18, %s2070_s18   ;;  %s1520_s17 = sphi %s1560_s17, %s2069_s17   ;;  %s1516_s16 = sphi %s1558_s16, %s2068_s16   ;;  %s1512_s15 = sphi %s1556_s15, %s2067_s15  }
   0x8   : > { %s1581_s21 = sadd.s32 1, %s1524_s18   ;;  %s31_s22 = sadd.s32 1, %s1520_s17 }
   0x9   : > { %s28_s23 = ssub.s32 %s1524_s18, %s1581_s21  ;;  %p38_p0 = scmp.ne.s32.totalorder %s1520_s17, %s1516_s16 }
   0xa   : > { %p29_p1 = scmp.eq.s32.totalorder %s28_s23, 0  ;;  %p39_p2 = scmp.eq.s32.totalorder %s1524_s18, 0 }
   0xb   : > { %p44_p3 = scmp.ne.s32.totalorder %s1516_s16, %s1512_s15  ;;  %p45_p4 = scmp.eq.s32.totalorder %s1577_s19, 0 }
   0xc   : > { %s1593_s24 = scalar_select %p29_p1, %s1520_s17, %s31_s22  }
   0xd   : > { %p1595_p5 = por %p39_p2, %p38_p0  ;;  %p1599_p6 = por %p45_p4, %p44_p3 }
   0xe   : > { %p115_p7 = scmp.eq.s32.totalorder %s1577_s19, 1  ;;  %p121_p8 = scmp.eq.s32.totalorder %s1086_s20, 1 }
   0xf   : > { %p1296_p10 = scmp.lt.s32.totalorder %s1524_s18, 2  ;;  %s170_s29 = sand.u32 1, %s1520_s17  }
  0x10   : > { %p1606_p11 = por %p115_p7, %p38_p0  ;;  %p1610_p12 = por %p121_p8, %p44_p3 }
  0x11   : > { %s1150_s30 = sshll.u32 %s1524_s18, 12  ;;  %s1089_s5 = sshll.u32 %s170_s29, 8 }
  0x12   : > { %s2061_s27 = scalar_select %p1606_p11, 1, 0 }
  0x13   : > { %s2062_s28 = scalar_select %p1610_p12, 1, 0 }
  0x14   : > { %s1619_s8 = scalar_lea.hbm %s2053_s0, %s1150_s30  ;;  %s174_s9 = scalar_lea.vmem [#allocation2], %s1089_s5 }
  0x15   : > { %s182_s10 = sshll.u32 %s174_s9, 4  ;;  %p1623_p13 = pnand %p1296_p10, %p1595_p5  ;;  %s1627_s10 = int_to_ptr.vmem [resolvable:$true] %s182_s10 }
  0x16   : > { %s1629_s12 = scalar_lea.sflag [#allocation3], %s170_s29  ;;  %s1396_s13 = scalar_lea.hbm %s1619_s8, 4096 }
  0x17   : > { %p1397_p0 = scmp.ne.s32.totalorder %s1619_s8, %s1396_s13  ;;  %p1398_p1 = pneg %p1623_p13 }
  0x18   : > { %s1401_s22 = scalar_lea.hbm %s2053_s0, 8192  ;;  %p1402_p4 = scmp.lt.u32.totalorder %s1619_s8, %s2053_s0 }
  0x19   : > { %p1399_p2 = pnand %p1398_p1, %p1397_p0  ;;  %p1403_p5 = scmp.lt.u32.totalorder %s1401_s22, %s1396_s13 }
  0x1a   : > { %p1405_p8 = scmp.lt.u32.totalorder %s1396_s13, %s1619_s8 }
  0x1b   : > { %p1400_p3 = pneg %p1399_p2  ;;  %p1404_p7 = por %p1403_p5, %p1402_p4 }
  0x1d   : > { %p1406_p10 = por %p1405_p8, %p1404_p7 }
  0x1f   : > { %p1407_p9 = pnand %p1406_p10, %p1400_p3 }
  0x21   : > { %1410 = shalt.err (!%p1407_p9)
}
  0x22   : > { %s1411_s29 = scalar_lea.vmem %s1627_s10, 4096  ;;  %s1526_s30 = smov [#allocation2]  }
  0x23   : > { %p1412_p0 = scmp.ne.s32.totalorder %s1627_s10, %s1411_s29  ;;  %s1416_s5 = sshll.u32 %s1526_s30, 4  ;;  %s1417_s5 = int_to_ptr.vmem [resolvable:$false] %s1416_s5 }
  0x24   : > { %s1418_s6 = scalar_lea.vmem %s1417_s5, 8192  ;;  %p1419_p11 = scmp.lt.s32.totalorder %s1627_s10, %s1417_s5 }
  0x25   : > { %p1414_p2 = pnand %p1412_p0, %p1398_p1  ;;  %p1420_p4 = scmp.lt.s32.totalorder %s1418_s6, %s1411_s29 }
  0x27   : > { %p1415_p12 = pneg %p1414_p2  ;;  %p1421_p5 = por %p1420_p4, %p1419_p11 }
  0x29   : > { %p1422_p7 = pnand %p1421_p5, %p1415_p12 }
  0x2b   : > { %1425 = shalt.err (!%p1422_p7)
}
  0x2c   : > { %s1527_s7 = smov 128   ;;  %s1528_s9 = smov 8  }
  0x2d   : > { %1288 = dma.hbm_to_vmem [thread:$0]  (!%p1623_p13), %s1619_s8, 4096, %s1627_s10, %s1629_s12, %s1527_s7, %s1527_s7, %s1528_s9  }
  0x2e   : > { %p1093_p9 = scmp.ge.s32.totalorder %s1524_s18, 1  ;;  %p190_p1 = scmp.lt.s32.totalorder %s1524_s18, 3 }
  0x30   : > { %p191_p3 = pnand %p1093_p9, %p190_p1 }
  0x31   : > { %s1660_s13 = sand.u32 (!%p191_p3), 1, %s1516_s16  }
  0x32   : > { %194 = sbr.rel (%p191_p3) target bundleno = 448 (0x1c0), region = 28  ;;  %s1094_s14 = sshll.u32 (!%p191_p3), %s1660_s13, 8 }
  0x33   : > { %s197_s20 = scalar_lea.sflag (!%p191_p3), [#allocation3], %s1660_s13  ;;  %s1664_s22 = scalar_lea.vmem (!%p191_p3), [#allocation2], %s1094_s14 }
  0x39   : > { %1499 = dma.done.wait (%p1599_p6), %s197_s20, 4096  }
  0x3a   : > { %1501 = vsyncadd (%p1599_p6), %s197_s20, 4294963200  ;;  %v1332_v0 = vld [vmem:[%s2054_s1 + $0x40] sm:$0xff]   ;;  %v1334_v2 = vld [vmem:[%s2054_s1 + $0x48] sm:$0xff]   ;;  %s1095_s11 = sshll.u32 %s1577_s19, 5  ;;  %vm722_vm0 = vcmask 523264   ;;  %s226_s30 = scalar_lea.vmem [#allocation5], %s1660_s13 }
  0x3b   : > { %v1333_v1 = vld [vmem:[%s2054_s1] sm:$0xff]   ;;  %1151 = vmatprep.subr.bf16.mxu0 %v1332_v0  ;;  %1263 = vmatprep.subr.bf16.mxu1 %v1332_v0  ;;  %v1335_v3 = vld [vmem:[%s2054_s1 + $0x8] sm:$0xff]   ;;  %v1336_v4 = vld [vmem:[%s2054_s1 + $0x50] sm:$0xff]   ;;  %p235_p6 = scmp.lt.s32.totalorder %s1095_s11, 63  ;;  %s954_s26 = sshll.u32 %s226_s30, 4  ;;  %vm824_vm1 = vcmask 516096   ;;  %s1978_s26 = int_to_ptr.vmem [resolvable:$true] %s954_s26 }
  0x3c   : > { %1152 = vmatpush3.bf16.msra.mxu0 %v1333_v1  ;;  %1271 = vmatpush3.bf16.msra.mxu1 %v1333_v1  ;;  %v1337_v5 = vld [vmem:[%s2054_s1 + $0x10] sm:$0xff]   ;;  %v1338_v6 = vld [vmem:[%s2054_s1 + $0x58] sm:$0xff]   ;;  %v1340_v8 = vld [vmem:[%s2054_s1 + $0x60] sm:$0xff]   ;;  %s232_s5 = scalar_lea.vmem [#allocation6], %s1660_s13  ;;  %s934_s10 = scalar_lea.sflag [#allocation4], %s1660_s13 }
  0x3d   : > { %1153 = vmatprep.subr.bf16.mxu0 %v1334_v2  ;;  %1264 = vmatprep.subr.bf16.mxu1 %v1334_v2  ;;  %v1339_v7 = vld [vmem:[%s2054_s1 + $0x18] sm:$0xff]   ;;  %v1341_v9 = vld [vmem:[%s2054_s1 + $0x20] sm:$0xff]   ;;  %v1342_v10 = vld [vmem:[%s2054_s1 + $0x68] sm:$0xff]   ;;  %s2072_s11 = smov (!%p235_p6, %s1095_s11), 63  ;;  %s967_s6 = sshll.u32 %s232_s5, 4  ;;  %s1986_s6 = int_to_ptr.vmem [resolvable:$true] %s967_s6 }
  0x3e   : > { %v1350_v11 = vld [vmem:[%s1664_s22 + $0x4] ss:$8 sps:$4 sm:$0xff]   ;;  %v1344_v13 = vld [vmem:[%s2054_s1 + $0x70] sm:$0xff]   ;;  %v1346_v16 = vld [vmem:[%s2054_s1 + $0x78] sm:$0xff]   ;;  %s1096_s12 = sshll.u32 %s2072_s11, 3  ;;  %s1426_s11 = scalar_lea.vmem %s1978_s26, 16 }
  0x3f   : > { %v1343_v12 = vld [vmem:[%s2054_s1 + $0x28] sm:$0xff]   ;;  %593 = vmatprep.mubr.bf16.mxu0 %v1350_v11  ;;  %v1345_v15 = vld [vmem:[%s2054_s1 + $0x30] sm:$0xff]   ;;  %v1347_v17 = vld [vmem:[%s2054_s1 + $0x38] sm:$0xff]   ;;  %s1754_s29 = scalar_lea.vmem %s2055_s2, %s1096_s12  ;;  %p1427_p11 = scmp.ne.s32.totalorder %s1978_s26, %s1426_s11 }
  0x40   : > { %1154 = vmatpush3.bf16.msra.mxu0 %v1335_v3  ;;  %1272 = vmatpush3.bf16.msra.mxu1 %v1335_v3  ;;  %v1362_v14 = vld [vmem:[%s1664_s22 + $0x84] ss:$8 sps:$4 sm:$0xff]   ;;  %v1348_v18 = vld [vmem:[%s1664_s22] ss:$8 sps:$4 sm:$0xff]   ;;  %v1351_v19 = vld [vmem:[%s1664_s22 + $0x14] ss:$8 sps:$4 sm:$0xff]  }
  0x41   : > { %1155 = vmatprep.subr.bf16.mxu0 %v1336_v4  ;;  %1265 = vmatprep.subr.bf16.mxu1 %v1336_v4  ;;  %v1360_v20 = vld [vmem:[%s1664_s22 + $0x80] ss:$8 sps:$4 sm:$0xff]   ;;  %v1366_v21 = vld [vmem:[%s1664_s22 + $0x94] ss:$8 sps:$4 sm:$0xff]   ;;  %v1353_v22 = vld [vmem:[%s1664_s22 + $0x10] ss:$8 sps:$4 sm:$0xff]  }
  0x42   : > { %657 = vmatprep.mubr.bf16.mxu1 %v1362_v14  ;;  %v1354_v23 = vld [vmem:[%s1664_s22 + $0x24] ss:$8 sps:$4 sm:$0xff]   ;;  %v1368_v24 = vld [vmem:[%s1664_s22 + $0x90] ss:$8 sps:$4 sm:$0xff]   ;;  %v1356_v26 = vld [vmem:[%s1664_s22 + $0x20] ss:$8 sps:$4 sm:$0xff]  }
  0x43   : > { %v1372_v25 = vld [vmem:[%s1664_s22 + $0xa4] ss:$8 sps:$4 sm:$0xff]   ;;  %v1357_v27 = vld [vmem:[%s1664_s22 + $0x34] ss:$8 sps:$4 sm:$0xff]   ;;  %v1374_v28 = vld [vmem:[%s1664_s22 + $0xa0] ss:$8 sps:$4 sm:$0xff]  }
  0x44   : > { %1156 = vmatpush3.bf16.msra.mxu0 %v1337_v5  ;;  %1273 = vmatpush3.bf16.msra.mxu1 %v1337_v5  ;;  %v1378_v29 = vld [vmem:[%s1664_s22 + $0xb4] ss:$8 sps:$4 sm:$0xff]   ;;  %v1359_v30 = vld [vmem:[%s1664_s22 + $0x30] ss:$8 sps:$4 sm:$0xff]   ;;  %v1363_v31 = vld [vmem:[%s1664_s22 + $0x44] ss:$8 sps:$4 sm:$0xff]  }
  0x45   : > { %1157 = vmatprep.subr.bf16.mxu0 %v1338_v6  ;;  %1266 = vmatprep.subr.bf16.mxu1 %v1338_v6  ;;  %v1380_v32 = vld [vmem:[%s1664_s22 + $0xb0] ss:$8 sps:$4 sm:$0xff]   ;;  %v1384_v33 = vld [vmem:[%s1664_s22 + $0xc4] ss:$8 sps:$4 sm:$0xff]   ;;  %v1365_v34 = vld [vmem:[%s1664_s22 + $0x40] ss:$8 sps:$4 sm:$0xff]  }
  0x46   : > { %v1369_v35 = vld [vmem:[%s1664_s22 + $0x54] ss:$8 sps:$4 sm:$0xff]   ;;  %v1386_v36 = vld [vmem:[%s1664_s22 + $0xc0] ss:$8 sps:$4 sm:$0xff]   ;;  %v1371_v38 = vld [vmem:[%s1664_s22 + $0x50] ss:$8 sps:$4 sm:$0xff]  }
  0x47   : > { %v1387_v37 = vld [vmem:[%s1664_s22 + $0xd4] ss:$8 sps:$4 sm:$0xff]   ;;  %v1375_v39 = vld [vmem:[%s1664_s22 + $0x64] ss:$8 sps:$4 sm:$0xff]   ;;  %v1389_v40 = vld [vmem:[%s1664_s22 + $0xd0] ss:$8 sps:$4 sm:$0xff]  }
  0x48   : > { %1158 = vmatpush3.bf16.msra.mxu0 %v1339_v7  ;;  %1274 = vmatpush3.bf16.msra.mxu1 %v1339_v7  ;;  %v1390_v41 = vld [vmem:[%s1664_s22 + $0xe4] ss:$8 sps:$4 sm:$0xff]   ;;  %v1377_v42 = vld [vmem:[%s1664_s22 + $0x60] ss:$8 sps:$4 sm:$0xff]   ;;  %v1381_v43 = vld [vmem:[%s1664_s22 + $0x74] ss:$8 sps:$4 sm:$0xff]  }
  0x49   : > { %1159 = vmatprep.subr.bf16.mxu0 %v1340_v8  ;;  %1267 = vmatprep.subr.bf16.mxu1 %v1340_v8  ;;  %v1392_v44 = vld [vmem:[%s1664_s22 + $0xe0] ss:$8 sps:$4 sm:$0xff]   ;;  %v1393_v45 = vld [vmem:[%s1664_s22 + $0xf4] ss:$8 sps:$4 sm:$0xff]   ;;  %v1383_v46 = vld [vmem:[%s1664_s22 + $0x70] ss:$8 sps:$4 sm:$0xff]  }
  0x4a   : > { %v1395_v47 = vld [vmem:[%s1664_s22 + $0xf0] ss:$8 sps:$4 sm:$0xff]   ;;  %s1145_s22 = sshll.u32 %s1577_s19, 4  ;;  %p2064_p12 = scmp.ne.s32.totalorder %s2061_s27, 0 }
  0x4b   : > { %s1976_s14 = scalar_lea.hbm %s2056_s3, %s1145_s22  ;;  %s1984_s8 = scalar_lea.hbm %s2057_s4, %s1145_s22 }
  0x4c   : > { %1160 = vmatpush3.bf16.msra.mxu0 %v1341_v9  ;;  %1275 = vmatpush3.bf16.msra.mxu1 %v1341_v9  ;;  %p1428_p13 = pnand %p1427_p11, %p2064_p12  ;;  %s1529_s12 = smov [#allocation5]  }
  0x4d   : > { %1161 = vmatprep.subr.bf16.mxu0 %v1342_v10  ;;  %1268 = vmatprep.subr.bf16.mxu1 %v1342_v10  ;;  %s1430_s23 = sshll.u32 %s1529_s12, 4  ;;  %s1431_s23 = int_to_ptr.vmem [resolvable:$false] %s1430_s23 }
  0x4e   : > { %p1429_p8 = pneg %p1428_p13  ;;  %s1432_s25 = scalar_lea.vmem %s1431_s23, 32 }
  0x4f   : > { %p1433_p10 = scmp.lt.s32.totalorder %s1978_s26, %s1431_s23  ;;  %p1434_p0 = scmp.lt.s32.totalorder %s1432_s25, %s1426_s11 }
  0x50   : > { %1162 = vmatpush3.bf16.msra.mxu0 %v1343_v12  ;;  %1276 = vmatpush3.bf16.msra.mxu1 %v1343_v12 }
  0x51   : > { %1163 = vmatprep.subr.bf16.mxu0 %v1344_v13  ;;  %1269 = vmatprep.subr.bf16.mxu1 %v1344_v13  ;;  %p1435_p2 = por %p1434_p0, %p1433_p10 }
  0x53   : > { %p1436_p4 = pnand %p1435_p2, %p1429_p8 }
  0x54   : > { %1164 = vmatpush3.bf16.msra.mxu0 %v1345_v15  ;;  %1277 = vmatpush3.bf16.msra.mxu1 %v1345_v15 }
  0x55   : > { %1165 = vmatprep.subr.bf16.mxu0 %v1346_v16  ;;  %1270 = vmatprep.subr.bf16.mxu1 %v1346_v16 }
  0x58   : > { %1166 = vmatpush3.bf16.msra.mxu0 %v1347_v17  ;;  %1278 = vmatpush3.bf16.msra.mxu1 %v1347_v17 }
  0x5b   : > { %594 = vmatmul.mubr.bf16.vlgmr.msra.gmra.mrb[0].mxu0 %v1348_v18  ;;  %658 = vmatmul.mubr.bf16.vlgmr.msra.gmra.mrb[0].mxu1 %v1360_v20 }
  0x5c   : > { %601 = vmatprep.mubr.bf16.mxu0 %v1351_v19  ;;  %665 = vmatprep.mubr.bf16.mxu1 %v1366_v21 }
  0x63   : > { %602 = vmatmul.mubr.bf16.gmra.mrb[4].mxu0 %v1353_v22  ;;  %666 = vmatmul.mubr.bf16.gmra.mrb[4].mxu1 %v1368_v24 }
  0x64   : > { %609 = vmatprep.mubr.bf16.mxu0 %v1354_v23  ;;  %673 = vmatprep.mubr.bf16.mxu1 %v1372_v25 }
  0x6b   : > { %610 = vmatmul.mubr.bf16.gmra.mrb[8].mxu0 %v1356_v26  ;;  %674 = vmatmul.mubr.bf16.gmra.mrb[8].mxu1 %v1374_v28 }
  0x6c   : > { %617 = vmatprep.mubr.bf16.mxu0 %v1357_v27  ;;  %681 = vmatprep.mubr.bf16.mxu1 %v1378_v29 }
  0x73   : > { %618 = vmatmul.mubr.bf16.gmra.mrb[12].mxu0 %v1359_v30  ;;  %682 = vmatmul.mubr.bf16.gmra.mrb[12].mxu1 %v1380_v32 }
  0x74   : > { %625 = vmatprep.mubr.bf16.mxu0 %v1363_v31  ;;  %689 = vmatprep.mubr.bf16.mxu1 %v1384_v33 }
  0x7b   : > { %626 = vmatmul.mubr.bf16.gmra.mrb[16].mxu0 %v1365_v34  ;;  %690 = vmatmul.mubr.bf16.gmra.mrb[16].mxu1 %v1386_v36 }
  0x7c   : > { %633 = vmatprep.mubr.bf16.mxu0 %v1369_v35  ;;  %697 = vmatprep.mubr.bf16.mxu1 %v1387_v37 }
  0x83   : > { %634 = vmatmul.mubr.bf16.gmra.mrb[20].mxu0 %v1371_v38  ;;  %698 = vmatmul.mubr.bf16.gmra.mrb[20].mxu1 %v1389_v40 }
  0x84   : > { %641 = vmatprep.mubr.bf16.mxu0 %v1375_v39  ;;  %705 = vmatprep.mubr.bf16.mxu1 %v1390_v41 }
  0x8b   : > { %642 = vmatmul.mubr.bf16.gmra.mrb[24].mxu0 %v1377_v42  ;;  %706 = vmatmul.mubr.bf16.gmra.mrb[24].mxu1 %v1392_v44 }
  0x8c   : > { %649 = vmatprep.mubr.bf16.mxu0 %v1381_v43  ;;  %713 = vmatprep.mubr.bf16.mxu1 %v1393_v45 }
  0x93   : > { %650 = vmatmul.mubr.bf16.gmra.mrb[28].mxu0 %v1383_v46  ;;  %714 = vmatmul.mubr.bf16.gmra.mrb[28].mxu1 %v1395_v47 }
 0x12e   : > { %v1167_v48 = vpop.f32.mrb[0].mxu0  ;;  %v1215_v50 = vpop.f32.mrb[0].mxu1 }
 0x12f   : > { %v1168_v49 = vpop.f32.mrb[1].mxu0  ;;  %v1216_v53 = vpop.f32.mrb[1].mxu1 }
 0x130   : > { %v1169_v51 = vadd.f32 %v1168_v49, %v1167_v48  ;;  %v1170_v52 = vpop.f32.mrb[2].mxu0  ;;  %v1756_v55 = vadd.f32 %v1216_v53, %v1215_v50  ;;  %v1218_v56 = vpop.f32.mrb[2].mxu1 }
 0x131   : > { %v1171_v54 = vpop.f32.mrb[3].mxu0  ;;  %v1219_v59 = vpop.f32.mrb[3].mxu1 }
 0x132   : > { %723 = vst.msk [vmem:[%s1754_s29] sm:$0xff] %vm722_vm0, %v1169_v51  ;;  %v826_v57 = vmul.f32 %v1169_v51, %v1169_v51  ;;  %v1172_v58 = vadd.f32 %v1171_v54, %v1170_v52  ;;  %739 = vst.msk [vmem:[%s1754_s29 + $0x80] sm:$0xff] %vm722_vm0, %v1756_v55  ;;  %v1763_v60 = vadd.f32 %v1219_v59, %v1218_v56  ;;  %v755_v61 = vsel %vm722_vm0, %v1169_v51, 0.0 }
 0x134   : > { %724 = vst.msk [vmem:[%s1754_s29 + $0x8] sm:$0xff] %vm722_vm0, %v1172_v58  ;;  %v756_v62 = vsel %vm722_vm0, %v1172_v58, 0.0  ;;  %v827_v63 = vmul.f32 %v1172_v58, %v1172_v58  ;;  %740 = vst.msk [vmem:[%s1754_s29 + $0x88] sm:$0xff] %vm722_vm0, %v1763_v60  ;;  %v843_v1 = vmul.f32 %v1763_v60, %v1763_v60  ;;  %v858_v2 = vsel %vm722_vm0, %v826_v57, 0.0 }
 0x135   : > { %v757_v0 = vadd.f32 %v756_v62, %v755_v61 }
 0x136   : > { %v859_v3 = vsel %vm722_vm0, %v827_v63, 0.0  ;;  %v1173_v4 = vpop.f32.mrb[4].mxu0  ;;  %v1777_v7 = vsel %vm722_vm0, %v843_v1, 0.0  ;;  %v1221_v8 = vpop.f32.mrb[4].mxu1 }
 0x137   : > { %v860_v5 = vadd.f32 %v859_v3, %v858_v2  ;;  %v1174_v6 = vpop.f32.mrb[5].mxu0  ;;  %v1222_v11 = vpop.f32.mrb[5].mxu1 }
 0x138   : > { %v1175_v9 = vadd.f32 %v1174_v6, %v1173_v4  ;;  %v1176_v10 = vpop.f32.mrb[6].mxu0  ;;  %v1223_v13 = vadd.f32 %v1222_v11, %v1221_v8  ;;  %v1224_v14 = vpop.f32.mrb[6].mxu1 }
 0x139   : > { %v1177_v12 = vpop.f32.mrb[7].mxu0  ;;  %v1225_v18 = vpop.f32.mrb[7].mxu1 }
 0x13a   : > { %725 = vst.msk [vmem:[%s1754_s29 + $0x10] sm:$0xff] %vm722_vm0, %v1175_v9  ;;  %v758_v15 = vsel %vm722_vm0, %v1175_v9, 0.0  ;;  %v828_v16 = vmul.f32 %v1175_v9, %v1175_v9  ;;  %v1178_v17 = vadd.f32 %v1177_v12, %v1176_v10  ;;  %741 = vst.msk [vmem:[%s1754_s29 + $0x90] sm:$0xff] %vm722_vm0, %v1223_v13  ;;  %v1785_v20 = vsel %vm722_vm0, %v1223_v13, 0.0 }
 0x13b   : > { %v759_v19 = vadd.f32 %v758_v15, %v757_v0  ;;  %v844_v21 = vmul.f32 %v1223_v13, %v1223_v13  ;;  %v1226_v22 = vadd.f32 %v1225_v18, %v1224_v14 }
 0x13c   : > { %v861_v23 = vsel %vm722_vm0, %v828_v16, 0.0  ;;  %726 = vst.msk [vmem:[%s1754_s29 + $0x18] sm:$0xff] %vm722_vm0, %v1178_v17  ;;  %v760_v24 = vsel %vm722_vm0, %v1178_v17, 0.0  ;;  %v829_v25 = vmul.f32 %v1178_v17, %v1178_v17 }
 0x13d   : > { %v862_v26 = vadd.f32 %v861_v23, %v860_v5  ;;  %v761_v27 = vadd.f32 %v760_v24, %v759_v19  ;;  %v1792_v28 = vsel %vm722_vm0, %v844_v21, 0.0  ;;  %742 = vst.msk [vmem:[%s1754_s29 + $0x98] sm:$0xff] %vm722_vm0, %v1226_v22  ;;  %v1797_v29 = vsel %vm722_vm0, %v1226_v22, 0.0 }
 0x13e   : > { %v863_v30 = vsel %vm722_vm0, %v829_v25, 0.0  ;;  %v1179_v31 = vpop.f32.mrb[8].mxu0  ;;  %v845_v32 = vmul.f32 %v1226_v22, %v1226_v22  ;;  %v1227_v35 = vpop.f32.mrb[8].mxu1 }
 0x13f   : > { %v864_v33 = vadd.f32 %v863_v30, %v862_v26  ;;  %v1180_v34 = vpop.f32.mrb[9].mxu0  ;;  %v1228_v39 = vpop.f32.mrb[9].mxu1 }
 0x140   : > { %v1181_v36 = vadd.f32 %v1180_v34, %v1179_v31  ;;  %v1182_v37 = vpop.f32.mrb[10].mxu0  ;;  %v1801_v38 = vsel %vm722_vm0, %v845_v32, 0.0  ;;  %v1229_v41 = vadd.f32 %v1228_v39, %v1227_v35  ;;  %v1230_v42 = vpop.f32.mrb[10].mxu1 }
 0x141   : > { %v1183_v40 = vpop.f32.mrb[11].mxu0  ;;  %v1231_v46 = vpop.f32.mrb[11].mxu1 }
 0x142   : > { %727 = vst.msk [vmem:[%s1754_s29 + $0x20] sm:$0xff] %vm722_vm0, %v1181_v36  ;;  %v762_v43 = vsel %vm722_vm0, %v1181_v36, 0.0  ;;  %v830_v44 = vmul.f32 %v1181_v36, %v1181_v36  ;;  %v1184_v45 = vadd.f32 %v1183_v40, %v1182_v37  ;;  %743 = vst.msk [vmem:[%s1754_s29 + $0xa0] sm:$0xff] %vm722_vm0, %v1229_v41  ;;  %v1809_v48 = vsel %vm722_vm0, %v1229_v41, 0.0 }
 0x143   : > { %v763_v47 = vadd.f32 %v762_v43, %v761_v27  ;;  %v846_v49 = vmul.f32 %v1229_v41, %v1229_v41  ;;  %v1232_v50 = vadd.f32 %v1231_v46, %v1230_v42 }
 0x144   : > { %v865_v51 = vsel %vm722_vm0, %v830_v44, 0.0  ;;  %728 = vst.msk [vmem:[%s1754_s29 + $0x28] sm:$0xff] %vm722_vm0, %v1184_v45  ;;  %v764_v52 = vsel %vm722_vm0, %v1184_v45, 0.0  ;;  %v831_v53 = vmul.f32 %v1184_v45, %v1184_v45 }
 0x145   : > { %v866_v54 = vadd.f32 %v865_v51, %v864_v33  ;;  %v765_v56 = vadd.f32 %v764_v52, %v763_v47  ;;  %v1816_v57 = vsel %vm722_vm0, %v846_v49, 0.0  ;;  %744 = vst.msk [vmem:[%s1754_s29 + $0xa8] sm:$0xff] %vm722_vm0, %v1232_v50  ;;  %v1821_v58 = vsel %vm722_vm0, %v1232_v50, 0.0 }
 0x146   : > { %v867_v59 = vsel %vm722_vm0, %v831_v53, 0.0  ;;  %v1185_v61 = vpop.f32.mrb[12].mxu0  ;;  %v847_v62 = vmul.f32 %v1232_v50, %v1232_v50  ;;  %v1233_v1 = vpop.f32.mrb[12].mxu1 }
 0x147   : > { %v868_v63 = vadd.f32 %v867_v59, %v866_v54  ;;  %v1186_v0 = vpop.f32.mrb[13].mxu0  ;;  %v1234_v5 = vpop.f32.mrb[13].mxu1 }
 0x148   : > { %v1187_v2 = vadd.f32 %v1186_v0, %v1185_v61  ;;  %v1188_v3 = vpop.f32.mrb[14].mxu0  ;;  %v1825_v4 = vsel %vm722_vm0, %v847_v62, 0.0  ;;  %v1235_v8 = vadd.f32 %v1234_v5, %v1233_v1  ;;  %v1236_v9 = vpop.f32.mrb[14].mxu1 }
 0x149   : > { %v1189_v6 = vpop.f32.mrb[15].mxu0  ;;  %v1237_v13 = vpop.f32.mrb[15].mxu1 }
 0x14a   : > { %729 = vst.msk [vmem:[%s1754_s29 + $0x30] sm:$0xff] %vm722_vm0, %v1187_v2  ;;  %v766_v10 = vsel %vm722_vm0, %v1187_v2, 0.0  ;;  %v832_v11 = vmul.f32 %v1187_v2, %v1187_v2  ;;  %v1190_v12 = vadd.f32 %v1189_v6, %v1188_v3  ;;  %745 = vst.msk [vmem:[%s1754_s29 + $0xb0] sm:$0xff] %vm722_vm0, %v1235_v8  ;;  %v1833_v15 = vsel %vm722_vm0, %v1235_v8, 0.0 }
 0x14b   : > { %v767_v14 = vadd.f32 %v766_v10, %v765_v56  ;;  %v848_v16 = vmul.f32 %v1235_v8, %v1235_v8  ;;  %v1238_v17 = vadd.f32 %v1237_v13, %v1236_v9 }
 0x14c   : > { %v869_v18 = vsel %vm722_vm0, %v832_v11, 0.0  ;;  %730 = vst.msk [vmem:[%s1754_s29 + $0x38] sm:$0xff] %vm722_vm0, %v1190_v12  ;;  %v768_v19 = vsel %vm722_vm0, %v1190_v12, 0.0  ;;  %v833_v21 = vmul.f32 %v1190_v12, %v1190_v12 }
 0x14d   : > { %v870_v22 = vadd.f32 %v869_v18, %v868_v63  ;;  %v769_v23 = vadd.f32 %v768_v19, %v767_v14  ;;  %v1840_v24 = vsel %vm722_vm0, %v848_v16, 0.0  ;;  %746 = vst.msk [vmem:[%s1754_s29 + $0xb8] sm:$0xff] %vm722_vm0, %v1238_v17  ;;  %v1845_v25 = vsel %vm722_vm0, %v1238_v17, 0.0 }
 0x14e   : > { %v871_v26 = vsel %vm722_vm0, %v833_v21, 0.0  ;;  %v1191_v27 = vpop.f32.mrb[16].mxu0  ;;  %v849_v30 = vmul.f32 %v1238_v17, %v1238_v17  ;;  %v1239_v33 = vpop.f32.mrb[16].mxu1 }
 0x14f   : > { %v872_v31 = vadd.f32 %v871_v26, %v870_v22  ;;  %v1192_v32 = vpop.f32.mrb[17].mxu0  ;;  %v1240_v37 = vpop.f32.mrb[17].mxu1 }
 0x150   : > { %v1193_v34 = vadd.f32 %v1192_v32, %v1191_v27  ;;  %v1194_v35 = vpop.f32.mrb[18].mxu0  ;;  %v1849_v36 = vsel %vm722_vm0, %v849_v30, 0.0  ;;  %v1241_v40 = vadd.f32 %v1240_v37, %v1239_v33  ;;  %v1242_v41 = vpop.f32.mrb[18].mxu1 }
 0x151   : > { %v1195_v39 = vpop.f32.mrb[19].mxu0  ;;  %v1243_v45 = vpop.f32.mrb[19].mxu1 }
 0x152   : > { %731 = vst.msk [vmem:[%s1754_s29 + $0x40] sm:$0xff] %vm722_vm0, %v1193_v34  ;;  %v770_v42 = vsel %vm722_vm0, %v1193_v34, 0.0  ;;  %v834_v43 = vmul.f32 %v1193_v34, %v1193_v34  ;;  %v1196_v44 = vadd.f32 %v1195_v39, %v1194_v35  ;;  %747 = vst.msk [vmem:[%s1754_s29 + $0xc0] sm:$0xff] %vm722_vm0, %v1241_v40  ;;  %v1857_v47 = vsel %vm722_vm0, %v1241_v40, 0.0 }
 0x153   : > { %v771_v46 = vadd.f32 %v770_v42, %v769_v23  ;;  %v850_v49 = vmul.f32 %v1241_v40, %v1241_v40  ;;  %v1244_v50 = vadd.f32 %v1243_v45, %v1242_v41 }
 0x154   : > { %v873_v51 = vsel %vm722_vm0, %v834_v43, 0.0  ;;  %732 = vst.msk [vmem:[%s1754_s29 + $0x48] sm:$0xff] %vm722_vm0, %v1196_v44  ;;  %v772_v52 = vsel %vm722_vm0, %v1196_v44, 0.0  ;;  %v835_v53 = vmul.f32 %v1196_v44, %v1196_v44 }
 0x155   : > { %v874_v54 = vadd.f32 %v873_v51, %v872_v31  ;;  %v773_v56 = vadd.f32 %v772_v52, %v771_v46  ;;  %v1864_v59 = vsel %vm722_vm0, %v850_v49, 0.0  ;;  %748 = vst.msk [vmem:[%s1754_s29 + $0xc8] sm:$0xff] %vm722_vm0, %v1244_v50  ;;  %v1869_v61 = vsel %vm722_vm0, %v1244_v50, 0.0 }
 0x156   : > { %v875_v62 = vsel %vm722_vm0, %v835_v53, 0.0  ;;  %v1197_v63 = vpop.f32.mrb[20].mxu0  ;;  %v851_v0 = vmul.f32 %v1244_v50, %v1244_v50  ;;  %v1245_v3 = vpop.f32.mrb[20].mxu1 }
 0x157   : > { %v876_v1 = vadd.f32 %v875_v62, %v874_v54  ;;  %v1198_v2 = vpop.f32.mrb[21].mxu0  ;;  %v1246_v9 = vpop.f32.mrb[21].mxu1 }
 0x158   : > { %v1199_v5 = vadd.f32 %v1198_v2, %v1197_v63  ;;  %v1200_v6 = vpop.f32.mrb[22].mxu0  ;;  %v1873_v8 = vsel %vm722_vm0, %v851_v0, 0.0  ;;  %v1247_v11 = vadd.f32 %v1246_v9, %v1245_v3  ;;  %v1248_v12 = vpop.f32.mrb[22].mxu1 }
 0x159   : > { %v1201_v10 = vpop.f32.mrb[23].mxu0  ;;  %v1249_v17 = vpop.f32.mrb[23].mxu1 }
 0x15a   : > { %733 = vst.msk [vmem:[%s1754_s29 + $0x50] sm:$0xff] %vm722_vm0, %v1199_v5  ;;  %v774_v13 = vsel %vm722_vm0, %v1199_v5, 0.0  ;;  %v836_v14 = vmul.f32 %v1199_v5, %v1199_v5  ;;  %v1202_v16 = vadd.f32 %v1201_v10, %v1200_v6  ;;  %749 = vst.msk [vmem:[%s1754_s29 + $0xd0] sm:$0xff] %vm722_vm0, %v1247_v11  ;;  %v1881_v19 = vsel %vm722_vm0, %v1247_v11, 0.0 }
 0x15b   : > { %v775_v18 = vadd.f32 %v774_v13, %v773_v56  ;;  %v852_v21 = vmul.f32 %v1247_v11, %v1247_v11  ;;  %v1250_v22 = vadd.f32 %v1249_v17, %v1248_v12 }
 0x15c   : > { %v877_v23 = vsel %vm722_vm0, %v836_v14, 0.0  ;;  %734 = vst.msk [vmem:[%s1754_s29 + $0x58] sm:$0xff] %vm722_vm0, %v1202_v16  ;;  %v776_v26 = vsel %vm722_vm0, %v1202_v16, 0.0  ;;  %v837_v27 = vmul.f32 %v1202_v16, %v1202_v16 }
 0x15d   : > { %v878_v30 = vadd.f32 %v877_v23, %v876_v1  ;;  %v777_v31 = vadd.f32 %v776_v26, %v775_v18  ;;  %v1888_v32 = vsel %vm722_vm0, %v852_v21, 0.0  ;;  %750 = vst.msk [vmem:[%s1754_s29 + $0xd8] sm:$0xff] %vm722_vm0, %v1250_v22  ;;  %v1893_v33 = vsel %vm722_vm0, %v1250_v22, 0.0 }
 0x15e   : > { %v879_v34 = vsel %vm722_vm0, %v837_v27, 0.0  ;;  %v1203_v35 = vpop.f32.mrb[24].mxu0  ;;  %v853_v37 = vmul.f32 %v1250_v22, %v1250_v22  ;;  %v1251_v41 = vpop.f32.mrb[24].mxu1 }
 0x15f   : > { %v880_v39 = vadd.f32 %v879_v34, %v878_v30  ;;  %v1204_v40 = vpop.f32.mrb[25].mxu0  ;;  %v1252_v45 = vpop.f32.mrb[25].mxu1 }
 0x160   : > { %v1205_v42 = vadd.f32 %v1204_v40, %v1203_v35  ;;  %v1206_v43 = vpop.f32.mrb[26].mxu0  ;;  %v1897_v44 = vsel %vm722_vm0, %v853_v37, 0.0  ;;  %v1253_v49 = vadd.f32 %v1252_v45, %v1251_v41  ;;  %v1254_v50 = vpop.f32.mrb[26].mxu1 }
 0x161   : > { %v1207_v46 = vpop.f32.mrb[27].mxu0  ;;  %v1255_v54 = vpop.f32.mrb[27].mxu1 }
 0x162   : > { %735 = vst.msk [vmem:[%s1754_s29 + $0x60] sm:$0xff] %vm722_vm0, %v1205_v42  ;;  %v778_v51 = vsel %vm722_vm0, %v1205_v42, 0.0  ;;  %v838_v52 = vmul.f32 %v1205_v42, %v1205_v42  ;;  %v1208_v53 = vadd.f32 %v1207_v46, %v1206_v43  ;;  %751 = vst.msk [vmem:[%s1754_s29 + $0xe0] sm:$0xff] %vm722_vm0, %v1253_v49  ;;  %v1905_v62 = vsel %vm722_vm0, %v1253_v49, 0.0 }
 0x163   : > { %v779_v56 = vadd.f32 %v778_v51, %v777_v31  ;;  %v854_v63 = vmul.f32 %v1253_v49, %v1253_v49  ;;  %v1256_v0 = vadd.f32 %v1255_v54, %v1254_v50  ;;  %v842_v43 = vmul.f32 %v1756_v55, %v1756_v55 }
 0x164   : > { %v881_v1 = vsel %vm722_vm0, %v838_v52, 0.0  ;;  %736 = vst.msk [vmem:[%s1754_s29 + $0x68] sm:$0xff] %vm722_vm0, %v1208_v53  ;;  %v780_v2 = vsel %vm722_vm0, %v1208_v53, 0.0  ;;  %v839_v3 = vmul.f32 %v1208_v53, %v1208_v53  ;;  %v786_v54 = vsel %vm722_vm0, %v1756_v55, 0.0 }
 0x165   : > { %v882_v5 = vadd.f32 %v881_v1, %v880_v39  ;;  %v781_v6 = vadd.f32 %v780_v2, %v779_v56  ;;  %v1912_v9 = vsel %vm722_vm0, %v854_v63, 0.0  ;;  %752 = vst.msk [vmem:[%s1754_s29 + $0xe8] sm:$0xff] %vm722_vm0, %v1256_v0  ;;  %v1917_v10 = vsel %vm722_vm0, %v1256_v0, 0.0 }
 0x166   : > { %v883_v11 = vsel %vm722_vm0, %v839_v3, 0.0  ;;  %v1209_v12 = vpop.f32.mrb[28].mxu0  ;;  %v855_v13 = vmul.f32 %v1256_v0, %v1256_v0  ;;  %v1257_v17 = vpop.f32.mrb[28].mxu1  ;;  %v889_v2 = vsel %vm722_vm0, %v842_v43, 0.0  ;;  %v788_v3 = vsel %vm722_vm0, %v1763_v60, 0.0 }
 0x167   : > { %v884_v14 = vadd.f32 %v883_v11, %v882_v5  ;;  %v1210_v16 = vpop.f32.mrb[29].mxu0  ;;  %v1258_v23 = vpop.f32.mrb[29].mxu1 }
 0x168   : > { %v1211_v18 = vadd.f32 %v1210_v16, %v1209_v12  ;;  %v1212_v21 = vpop.f32.mrb[30].mxu0  ;;  %v915_v22 = vsel %vm722_vm0, %v855_v13, 0.0  ;;  %v1259_v27 = vadd.f32 %v1258_v23, %v1257_v17  ;;  %v1260_v30 = vpop.f32.mrb[30].mxu1 }
 0x169   : > { %v1213_v26 = vpop.f32.mrb[31].mxu0  ;;  %v1261_v37 = vpop.f32.mrb[31].mxu1 }
 0x16a   : > { %737 = vst.msk [vmem:[%s1754_s29 + $0x70] sm:$0xff] %vm722_vm0, %v1211_v18  ;;  %v782_v31 = vsel %vm722_vm0, %v1211_v18, 0.0  ;;  %v840_v34 = vmul.f32 %v1211_v18, %v1211_v18  ;;  %v1214_v35 = vadd.f32 %v1213_v26, %v1212_v21  ;;  %753 = vst.msk [vmem:[%s1754_s29 + $0xf0] sm:$0xff] %vm722_vm0, %v1259_v27  ;;  %v814_v40 = vsel %vm722_vm0, %v1259_v27, 0.0 }
 0x16b   : > { %v783_v39 = vadd.f32 %v782_v31, %v781_v6  ;;  %v856_v41 = vmul.f32 %v1259_v27, %v1259_v27  ;;  %v1262_v42 = vadd.f32 %v1261_v37, %v1260_v30 }
 0x16c   : > { %v885_v45 = vsel %vm722_vm0, %v840_v34, 0.0  ;;  %738 = vst.msk [vmem:[%s1754_s29 + $0x78] sm:$0xff] %vm722_vm0, %v1214_v35  ;;  %v784_v46 = vsel %vm722_vm0, %v1214_v35, 0.0  ;;  %v841_v49 = vmul.f32 %v1214_v35, %v1214_v35 }
 0x16d   : > { %v886_v50 = vadd.f32 %v885_v45, %v884_v14  ;;  %v785_v51 = vadd.f32 %v784_v46, %v783_v39  ;;  %v917_v52 = vsel %vm722_vm0, %v856_v41, 0.0  ;;  %754 = vst.msk [vmem:[%s1754_s29 + $0xf8] sm:$0xff] %vm722_vm0, %v1262_v42  ;;  %v816_v53 = vsel %vm722_vm0, %v1262_v42, 0.0 }
 0x16e   : > { %v887_v56 = vsel %vm722_vm0, %v841_v49, 0.0  ;;  %v857_v63 = vmul.f32 %v1262_v42, %v1262_v42 }
 0x16f   : > { %v787_v0 = vadd.f32 %v786_v54, %v785_v51  ;;  %v888_v1 = vadd.f32 %v887_v56, %v886_v50 }
 0x170   : > { %v919_v5 = vsel %vm722_vm0, %v857_v63, 0.0 }
 0x171   : > { %v789_v6 = vadd.f32 %v788_v3, %v787_v0  ;;  %v890_v11 = vadd.f32 %v889_v2, %v888_v1 }
 0x173   : > { %v791_v12 = vadd.f32 %v1785_v20, %v789_v6  ;;  %v892_v13 = vadd.f32 %v1777_v7, %v890_v11 }
 0x175   : > { %v793_v55 = vadd.f32 %v1797_v29, %v791_v12  ;;  %v894_v14 = vadd.f32 %v1792_v28, %v892_v13 }
 0x177   : > { %v896_v16 = vadd.f32 %v1801_v38, %v894_v14  ;;  %v795_v17 = vadd.f32 %v1809_v48, %v793_v55 }
 0x179   : > { %v797_v18 = vadd.f32 %v1821_v58, %v795_v17  ;;  %v898_v60 = vadd.f32 %v1816_v57, %v896_v16 }
 0x17b   : > { %v799_v21 = vadd.f32 %v1833_v15, %v797_v18  ;;  %v900_v23 = vadd.f32 %v1825_v4, %v898_v60 }
 0x17d   : > { %v801_v20 = vadd.f32 %v1845_v25, %v799_v21  ;;  %v902_v7 = vadd.f32 %v1840_v24, %v900_v23 }
 0x17f   : > { %v803_v29 = vadd.f32 %v1857_v47, %v801_v20  ;;  %v904_v28 = vadd.f32 %v1849_v36, %v902_v7 }
 0x181   : > { %v906_v38 = vadd.f32 %v1864_v59, %v904_v28  ;;  %v805_v48 = vadd.f32 %v1869_v61, %v803_v29 }
 0x183   : > { %v908_v58 = vadd.f32 %v1873_v8, %v906_v38  ;;  %v807_v57 = vadd.f32 %v1881_v19, %v805_v48 }
 0x185   : > { %v910_v15 = vadd.f32 %v1888_v32, %v908_v58  ;;  %v809_v4 = vadd.f32 %v1893_v33, %v807_v57 }
 0x187   : > { %v912_v25 = vadd.f32 %v1897_v44, %v910_v15  ;;  %v811_v24 = vadd.f32 %v1905_v62, %v809_v4 }
 0x189   : > { %v914_v36 = vadd.f32 %v1912_v9, %v912_v25  ;;  %v813_v47 = vadd.f32 %v1917_v10, %v811_v24 }
 0x18b   : > { %v916_v59 = vadd.f32 %v915_v22, %v914_v36  ;;  %v815_v61 = vadd.f32 %v814_v40, %v813_v47 }
 0x18d   : > { %v918_v26 = vadd.f32 %v917_v52, %v916_v59  ;;  %v817_v8 = vadd.f32 %v816_v53, %v815_v61 }
 0x18f   : > { %v818_v19 = vrot.slane %v817_v8, 4  ;;  %v920_v32 = vadd.f32 %v919_v5, %v918_v26 }
 0x191   : > { %v819_v27 = vadd.f32 %v818_v19, %v817_v8  ;;  %v921_v33 = vrot.slane %v920_v32, 4 }
 0x193   : > { %v820_v30 = vrot.slane %v819_v27, 2  ;;  %v922_v44 = vadd.f32 %v921_v33, %v920_v32 }
 0x195   : > { %v821_v31 = vadd.f32 %v820_v30, %v819_v27  ;;  %v923_v34 = vrot.slane %v922_v44, 2 }
 0x197   : > { %v822_v62 = vrot.slane %v821_v31, 1  ;;  %v924_v9 = vadd.f32 %v923_v34, %v922_v44 }
 0x199   : > { %v823_v10 = vadd.f32 %v822_v62, %v821_v31  ;;  %v925_v22 = vrot.slane %v924_v9, 1 }
 0x19b   : > { %825 = vst.msk [vmem:[%s226_s30] sm:$0x1] %vm824_vm1, %v823_v10  ;;  %v926_v35 = vadd.f32 %v925_v22, %v924_v9 }
 0x19c   : > { %1439 = shalt.err (!%p1436_p4)
}
 0x19d   : > { %s1440_s29 = scalar_lea.hbm %s1976_s14, 16  ;;  %s1444_s7 = scalar_lea.hbm %s2056_s3, 32 }
 0x19e   : > { %p1441_p5 = scmp.ne.s32.totalorder %s1976_s14, %s1440_s29  ;;  %p1445_p1 = scmp.lt.u32.totalorder %s1976_s14, %s2056_s3 }
 0x19f   : > { %p1446_p3 = scmp.lt.u32.totalorder %s1444_s7, %s1440_s29  ;;  %p1448_p11 = scmp.lt.u32.totalorder %s1440_s29, %s1976_s14 }
 0x1a0   : > { %p1442_p7 = pnand %p1441_p5, %p2064_p12 }
 0x1a1   : > { %p1447_p6 = por %p1446_p3, %p1445_p1 }
 0x1a2   : > { %p1443_p9 = pneg %p1442_p7 }
 0x1a3   : > { %p1449_p13 = por %p1448_p11, %p1447_p6 }
 0x1a5   : > { %p1450_p8 = pnand %p1449_p13, %p1443_p9 }
 0x1a7   : > { %1453 = shalt.err (!%p1450_p8)
}
 0x1a8   : > { %1281 = dma.vmem_to_hbm [thread:$0]  (%p2064_p12), %s1978_s26, 16, %s1976_s14, %s934_s10   ;;  %927 = vst.msk [vmem:[%s232_s5] sm:$0x1] %vm824_vm1, %v926_v35 }
 0x1a9   : > { %s938_s20 = scalar_lea.sflag [#allocation7], %s1660_s13  ;;  %s1454_s11 = scalar_lea.vmem %s1986_s6, 16 }
 0x1aa   : > { %p1455_p10 = scmp.ne.s32.totalorder %s1986_s6, %s1454_s11  ;;  %s1530_s12 = smov [#allocation6]  }
 0x1ab   : > { %s1458_s23 = sshll.u32 %s1530_s12, 4  ;;  %s1459_s23 = int_to_ptr.vmem [resolvable:$false] %s1458_s23 }
 0x1ac   : > { %p1456_p0 = pnand %p1455_p10, %p2064_p12  ;;  %s1460_s25 = scalar_lea.vmem %s1459_s23, 32 }
 0x1ad   : > { %p1461_p4 = scmp.lt.s32.totalorder %s1986_s6, %s1459_s23  ;;  %p1462_p5 = scmp.lt.s32.totalorder %s1460_s25, %s1454_s11 }
 0x1ae   : > { %p1457_p2 = pneg %p1456_p0 }
 0x1af   : > { %p1463_p7 = por %p1462_p5, %p1461_p4 }
 0x1b1   : > { %p1464_p9 = pnand %p1463_p7, %p1457_p2 }
 0x1b3   : > { %1467 = shalt.err (!%p1464_p9)
}
 0x1b4   : > { %s1468_s13 = scalar_lea.hbm %s1984_s8, 16  ;;  %s1472_s14 = scalar_lea.hbm %s2057_s4, 32 }
 0x1b5   : > { %p1469_p1 = scmp.ne.s32.totalorder %s1984_s8, %s1468_s13  ;;  %p1473_p11 = scmp.lt.u32.totalorder %s1984_s8, %s2057_s4 }
 0x1b6   : > { %p1474_p13 = scmp.lt.u32.totalorder %s1472_s14, %s1468_s13  ;;  %p1476_p10 = scmp.lt.u32.totalorder %s1468_s13, %s1984_s8 }
 0x1b7   : > { %p1470_p3 = pnand %p1469_p1, %p2064_p12 }
 0x1b8   : > { %p1475_p8 = por %p1474_p13, %p1473_p11 }
 0x1b9   : > { %p1471_p6 = pneg %p1470_p3 }
 0x1ba   : > { %p1477_p0 = por %p1476_p10, %p1475_p8 }
 0x1bc   : > { %p1478_p2 = pnand %p1477_p0, %p1471_p6 }
 0x1be   : > { %1481 = shalt.err (!%p1478_p2)
}
 0x1bf   : > { %1282 = dma.vmem_to_hbm [thread:$0]  (%p2064_p12), %s1986_s6, 16, %s1984_s8, %s938_s20  }
 0x1c0 PF: > { %s987_s22 = sand.u32 1, %s1512_s15   ;;  %p2065_p4 = scmp.ne.s32.totalorder %s2062_s28, 0 }
 0x1c1   : > { %p2066_p5 = scmp.ge.s32.totalorder %s1524_s18, 2  ;;  %s988_s30 = scalar_lea.sflag [#allocation4], %s987_s22 }
 0x1c3   : > { %p1290_p7 = pnand %p2066_p5, %p2065_p4 }
 0x1c5   : > { %1503 = dma.done.wait (!%p1290_p7), %s988_s30, 16  }
 0x1c6   : > { %1505 = vsyncadd (!%p1290_p7), %s988_s30, 4294967280  ;;  %s996_s7 = scalar_lea.sflag [#allocation7], %s987_s22 }
 0x1c7   : > { %1507 = dma.done.wait (!%p1290_p7), %s996_s7, 16  }
 0x1c8   : > { %1509 = vsyncadd (!%p1290_p7), %s996_s7, 4294967280  ;;  %p21_p12 = scmp.ge.s32.totalorder %s1581_s21, 4   ;;  %s2067_s15 = smov %s1516_s16 }
 0x1c9   : > { %s2068_s16 = smov %s1520_s17  ;;  %s2069_s17 = smov %s1593_s24 }
 0x1ca   : > { %s2070_s18 = smov %s1581_s21  ;;  %23 = sbr.rel (!%p21_p12) target bundleno = 7 (0x7), region = 102 }
 0x1d1   :  { %1000 = vsyncpa [#allocation3], 1 }
 0x1d2   :  { %1002 = vsyncpa [#allocation3 + $0x1], 1 }
 0x1d3   :  { %1003 = vsyncpa [#allocation4], 1 }
 0x1d4   :  { %1005 = vsyncpa [#allocation4 + $0x1], 1 }
 0x1d5   :  { %1006 = vsyncpa [#allocation7], 1 }
 0x1d6   :  { %1008 = vsyncpa [#allocation7 + $0x1], 1 }

</bundles_post_ra>
